<compile_context>
chip_gen: v5e
topology: v5e:2x2
jax: 0.10.0
libtpu: 0.0.40
codegen_flags: <defaults>
</compile_context>

<pallas_src>
import functools

import jax
import jax.numpy as jnp
from jax.experimental import pallas as pl
from jax.experimental.pallas import tpu as pltpu


def convmlp_kernel(x_ref, w1_ref, b1_ref, w2_ref, b2_ref, o_ref, *, chunk):
    # x_ref : (C_in, T)      -- pixels on the lane axis
    # w1_ref: (hidden, C_in)  b1_ref: (hidden, 1)
    # w2_ref: (C_out, hidden) b2_ref: (C_out, 1)
    # o_ref : (C_out, T)
    T = x_ref.shape[-1]
    n_chunks = T // chunk

    # Weights / biases are grid-invariant and VMEM-resident; load once per step.
    w1 = w1_ref[...]
    w2 = w2_ref[...]
    b1 = b1_ref[...].astype(jnp.float32)
    b2 = b2_ref[...].astype(jnp.float32)

    def body(i, carry):
        start = pl.multiple_of(i * chunk, chunk)
        x = x_ref[:, pl.ds(start, chunk)]
        h = jnp.dot(w1, x, preferred_element_type=jnp.float32) + b1
        h = jnp.maximum(h, 0.0)                       # ReLU (act_layer=nn.ReLU)
        # norm = Identity, drop = Dropout(p=0.0) -> no-ops in forward.
        # Note: h.astype(w2.dtype) is a no-op when w2 is f32 (recommended on v5e).
        o = jnp.dot(w2, h.astype(w2.dtype), preferred_element_type=jnp.float32) + b2
        o_ref[:, pl.ds(start, chunk)] = o.astype(o_ref.dtype)
        return carry

    # Sub-tile the compute over T: keeps the hidden x T f32 intermediate small (vreg
    # pressure) while retaining the big-tile DMA amortization.
    jax.lax.fori_loop(0, n_chunks, body, 0, unroll=True)


def _round_up(a, b):
    return ((a + b - 1) // b) * b


def _choose_tiles(N, HW, max_tile, max_chunk):
    # Lane-aligned pixel tile; big tiles amortize the per-grid-step pipeline overhead.
    tile = min(max_tile, _round_up(HW, 128))
    # v7x has 2 TensorCores: ensure the "parallel" grid has >= 2 steps so both get work.
    if N * pl.cdiv(HW, tile) < 2 and HW > 128:
        tile = _round_up(pl.cdiv(HW, 2), 128)
    # In-kernel sub-tiling chunk (multiple of 128); tile must be a multiple of chunk.
    chunk = min(tile, max_chunk)
    if tile % chunk:
        tile = (tile // chunk) * chunk
    return tile, chunk


def conv_mlp(x_nchw, w1, b1, w2, b2, *, max_tile=2048, max_chunk=512, out_dtype=None):
    """ConvMlp forward on NCHW input.

    x_nchw: (N, C_in, H, W)
    w1:     (hidden, C_in)   -- fc1 Conv2d weight (out, in) with the 1x1 squeezed
    b1:     (hidden,)
    w2:     (C_out, hidden)  -- fc2 Conv2d weight
    b2:     (C_out,)
    out_dtype: output dtype override (defaults to x dtype); bf16 halves output HBM bytes.
    """
    N, C_in, H, W = x_nchw.shape
    hidden = w1.shape[0]
    C_out = w2.shape[0]
    HW = H * W
    out_dtype = out_dtype or x_nchw.dtype

    tile_hw, chunk = _choose_tiles(N, HW, max_tile, max_chunk)
    grid = (N, pl.cdiv(HW, tile_hw))

    # NCHW -> (N, C_in, HW): pure reshape, no transpose, no pad (ragged last tile is
    # read-padded / write-masked by the Pallas pipeline; garbage lanes only affect
    # masked-out output columns since the compute is per-pixel independent).
    x3 = x_nchw.reshape(N, C_in, HW)
    b1_2d = b1.reshape(hidden, 1)
    b2_2d = b2.reshape(C_out, 1)

    flops = 2 * N * HW * hidden * (C_in + C_out)
    bytes_accessed = (x3.size * x3.dtype.itemsize
                      + w1.size * w1.dtype.itemsize
                      + w2.size * w2.dtype.itemsize
                      + b1.size * b1.dtype.itemsize
                      + b2.size * b2.dtype.itemsize
                      + N * C_out * HW * jnp.dtype(out_dtype).itemsize)

    out3 = pl.pallas_call(
        functools.partial(convmlp_kernel, chunk=chunk),
        out_shape=jax.ShapeDtypeStruct((N, C_out, HW), out_dtype),
        grid_spec=pltpu.PrefetchScalarGridSpec(
            num_scalar_prefetch=0,
            grid=grid,
            in_specs=[
                # x tile: one batch image, all channels, tile_hw pixels on lanes.
                pl.BlockSpec((pl.Squeezed(), C_in, tile_hw), lambda n, j: (n, 0, j)),
                # Grid-invariant weights / biases (stay resident in VMEM).
                pl.BlockSpec((hidden, C_in), lambda n, j: (0, 0)),
                pl.BlockSpec((hidden, 1), lambda n, j: (0, 0)),
                pl.BlockSpec((C_out, hidden), lambda n, j: (0, 0)),
                pl.BlockSpec((C_out, 1), lambda n, j: (0, 0)),
            ],
            # Lane-dense output slab: last dim is a multiple of 128 -> unmasked stores
            # (only the ragged final block, if any, uses masked write-back).
            out_specs=pl.BlockSpec((pl.Squeezed(), C_out, tile_hw), lambda n, j: (n, 0, j)),
        ),
        compiler_params=pltpu.CompilerParams(
            dimension_semantics=("parallel", "parallel")),
        cost_estimate=pl.CostEstimate(
            flops=flops, transcendentals=0, bytes_accessed=bytes_accessed),
    )(x3, w1, b1_2d, w2, b2_2d)

    # (N, C_out, HW) -> NCHW: pure reshape, no transpose, no slice.
    return out3.reshape(N, C_out, H, W)


def reference(x_nchw, w1, b1, w2, b2):
    # Pure-JAX reference: 1x1 convs == per-pixel matmuls over channels.
    h = jnp.einsum("nchw,dc->ndhw", x_nchw, w1) + b1[None, :, None, None]
    h = jnp.maximum(h, 0.0)
    o = jnp.einsum("ndhw,ed->nehw", h, w2) + b2[None, :, None, None]
    return o


if __name__ == "__main__":
    # Shapes implied by the module: in_features=4, hidden_features=32, out_features=4.
    N, C_in, H, W = 2, 4, 16, 16
    hidden = 32
    C_out = C_in

    key = jax.random.PRNGKey(0)
    kx, k1, kb1, k2, kb2 = jax.random.split(key, 5)
    x = jax.random.normal(kx, (N, C_in, H, W), dtype=jnp.float32)
    # Conv2d(kernel_size=1) weights in PyTorch layout (out, in, 1, 1) squeezed -> (out, in).
    w1 = jax.random.normal(k1, (hidden, C_in), dtype=jnp.float32) * 0.1
    b1 = jax.random.normal(kb1, (hidden,), dtype=jnp.float32) * 0.1
    w2 = jax.random.normal(k2, (C_out, hidden), dtype=jnp.float32) * 0.1
    b2 = jax.random.normal(kb2, (C_out,), dtype=jnp.float32) * 0.1

    ref = reference(x, w1, b1, w2, b2)

    # f32 path (tight tolerance vs reference).
    out = jax.block_until_ready(conv_mlp(x, w1, b1, w2, b2))
    assert out.shape == (N, C_out, H, W), out.shape
    assert jnp.allclose(out, ref, atol=1e-5, rtol=1e-5), "f32 mismatch vs reference"

    # Non-128-aligned spatial size (exercises the ragged last tile path: no wrapper pad/slice).
    H2, W2 = 14, 14
    x2 = jax.random.normal(kx, (N, C_in, H2, W2), dtype=jnp.float32)
    ref2 = reference(x2, w1, b1, w2, b2)
    out2 = jax.block_until_ready(conv_mlp(x2, w1, b1, w2, b2))
    assert out2.shape == (N, C_out, H2, W2), out2.shape
    assert jnp.allclose(out2, ref2, atol=1e-5, rtol=1e-5), "ragged-HW mismatch vs reference"

    # bf16 inputs/weights (memory-bound op: halves HBM bytes; f32 accumulation kept).
    out_bf16 = jax.block_until_ready(
        conv_mlp(x.astype(jnp.bfloat16),
                 w1.astype(jnp.bfloat16), b1,
                 w2.astype(jnp.bfloat16), b2))
    assert out_bf16.shape == (N, C_out, H, W), out_bf16.shape
    assert jnp.allclose(out_bf16.astype(jnp.float32), ref, atol=5e-2, rtol=5e-2), \
        "bf16 mismatch vs reference"

    print("KERNEL_OK")
</pallas_src>

<mosaic_0001>
module attributes {stable_mosaic.version = 11 : i64} {
  func.func @convmlp_kernel(%arg0: i32, %arg1: i32, %arg2: memref<1x4x256xf32, #tpu.memory_space<vmem>>, %arg3: memref<32x4xf32, #tpu.memory_space<vmem>>, %arg4: memref<32x1xf32, #tpu.memory_space<vmem>>, %arg5: memref<4x32xf32, #tpu.memory_space<vmem>>, %arg6: memref<4x1xf32, #tpu.memory_space<vmem>>, %arg7: memref<1x4x256xf32, #tpu.memory_space<vmem>>) attributes {dimension_semantics = [#tpu.dimension_semantics<parallel>, #tpu.dimension_semantics<parallel>], iteration_bounds = array<i64: 2, 1>, scalar_prefetch = 0 : i64, scratch_operands = 0 : i64, tpu.core_type = #tpu.core_type<tc>, window_params = [{transform_indices = @transform_0, window_bounds = array<i64: 1, 4, 256>}, {pipeline_mode = #tpu.pipeline_mode<synchronous>, transform_indices = @transform_1, window_bounds = array<i64: 32, 4>}, {pipeline_mode = #tpu.pipeline_mode<synchronous>, transform_indices = @transform_2, window_bounds = array<i64: 32, 1>}, {pipeline_mode = #tpu.pipeline_mode<synchronous>, transform_indices = @transform_3, window_bounds = array<i64: 4, 32>}, {pipeline_mode = #tpu.pipeline_mode<synchronous>, transform_indices = @transform_4, window_bounds = array<i64: 4, 1>}, {transform_indices = @transform_5, window_bounds = array<i64: 1, 4, 256>}]} {
    %c0 = arith.constant 0 : index
    %c0_0 = arith.constant 0 : index
    %0 = vector.load %arg3[%c0, %c0_0] : memref<32x4xf32, #tpu.memory_space<vmem>>, vector<32x4xf32>
    %c0_1 = arith.constant 0 : index
    %c0_2 = arith.constant 0 : index
    %1 = vector.load %arg5[%c0_1, %c0_2] : memref<4x32xf32, #tpu.memory_space<vmem>>, vector<4x32xf32>
    %c0_3 = arith.constant 0 : index
    %c0_4 = arith.constant 0 : index
    %2 = vector.load %arg4[%c0_3, %c0_4] : memref<32x1xf32, #tpu.memory_space<vmem>>, vector<32x1xf32>
    %c0_5 = arith.constant 0 : index
    %c0_6 = arith.constant 0 : index
    %3 = vector.load %arg6[%c0_5, %c0_6] : memref<4x1xf32, #tpu.memory_space<vmem>>, vector<4x1xf32>
    %c0_i32 = arith.constant 0 : i32
    %c256_i32 = arith.constant 256 : i32
    %4 = arith.muli %c0_i32, %c256_i32 : i32
    %5 = tpu.assume_multiple %4, 256 : i32
    %c0_7 = arith.constant 0 : index
    %c0_8 = arith.constant 0 : index
    %6 = arith.index_cast %5 : i32 to index
    %7 = vector.load %arg2[%c0_7, %c0_8, %6] : memref<1x4x256xf32, #tpu.memory_space<vmem>>, vector<1x4x256xf32>
    %8 = vector.shape_cast %7 : vector<1x4x256xf32> to vector<4x256xf32>
    %cst = arith.constant dense<0.000000e+00> : vector<32x256xf32>
    %9 = tpu.matmul %0, %8, %cst {dimension_numbers = #tpu.dot_dimension_numbers<[1], [0], [0], [1], [0, 0, 1, 1], [], []>} : vector<32x4xf32>, vector<4x256xf32>, vector<32x256xf32> -> vector<32x256xf32>
    %10 = vector.broadcast %2 : vector<32x1xf32> to vector<32x256xf32>
    %11 = arith.addf %9, %10 : vector<32x256xf32>
    %cst_9 = arith.constant 0.000000e+00 : f32
    %12 = vector.broadcast %cst_9 : f32 to vector<32x256xf32>
    %13 = arith.maximumf %11, %12 : vector<32x256xf32>
    %cst_10 = arith.constant dense<0.000000e+00> : vector<4x256xf32>
    %14 = tpu.matmul %1, %13, %cst_10 {dimension_numbers = #tpu.dot_dimension_numbers<[1], [0], [0], [1], [0, 0, 1, 1], [], []>} : vector<4x32xf32>, vector<32x256xf32>, vector<4x256xf32> -> vector<4x256xf32>
    %15 = vector.broadcast %3 : vector<4x1xf32> to vector<4x256xf32>
    %16 = arith.addf %14, %15 : vector<4x256xf32>
    %c0_11 = arith.constant 0 : index
    %c0_12 = arith.constant 0 : index
    %17 = arith.index_cast %5 : i32 to index
    %18 = vector.load %arg7[%c0_11, %c0_12, %17] : memref<1x4x256xf32, #tpu.memory_space<vmem>>, vector<1x4x256xf32>
    %19 = vector.shape_cast %18 : vector<1x4x256xf32> to vector<4x256xf32>
    %20 = vector.shape_cast %16 : vector<4x256xf32> to vector<1x4x256xf32>
    tpu.vector_store %arg7[%c0_11, %c0_12, %17], %20 {strides = array<i32>} : memref<1x4x256xf32, #tpu.memory_space<vmem>>, vector<1x4x256xf32>,
    %c1_i32 = arith.constant 1 : i32
    return
  }
  func.func @transform_0(%arg0: i32, %arg1: i32) -> (i32, i32, i32) {
    %c0_i32 = arith.constant 0 : i32
    %c0_i32_0 = arith.constant 0 : i32
    return %arg0, %c0_i32, %arg1 : i32, i32, i32
  }
  func.func @transform_1(%arg0: i32, %arg1: i32) -> (i32, i32) {
    %c0_i32 = arith.constant 0 : i32
    %c0_i32_0 = arith.constant 0 : i32
    %c0_i32_1 = arith.constant 0 : i32
    return %c0_i32, %c0_i32_0 : i32, i32
  }
  func.func @transform_2(%arg0: i32, %arg1: i32) -> (i32, i32) {
    %c0_i32 = arith.constant 0 : i32
    %c0_i32_0 = arith.constant 0 : i32
    %c0_i32_1 = arith.constant 0 : i32
    return %c0_i32, %c0_i32_0 : i32, i32
  }
  func.func @transform_3(%arg0: i32, %arg1: i32) -> (i32, i32) {
    %c0_i32 = arith.constant 0 : i32
    %c0_i32_0 = arith.constant 0 : i32
    %c0_i32_1 = arith.constant 0 : i32
    return %c0_i32, %c0_i32_0 : i32, i32
  }
  func.func @transform_4(%arg0: i32, %arg1: i32) -> (i32, i32) {
    %c0_i32 = arith.constant 0 : i32
    %c0_i32_0 = arith.constant 0 : i32
    %c0_i32_1 = arith.constant 0 : i32
    return %c0_i32, %c0_i32_0 : i32, i32
  }
  func.func @transform_5(%arg0: i32, %arg1: i32) -> (i32, i32, i32) {
    %c0_i32 = arith.constant 0 : i32
    %c0_i32_0 = arith.constant 0 : i32
    return %arg0, %c0_i32, %arg1 : i32, i32, i32
  }
}

</mosaic_0001>

<bundles_post_ra>
// kernel: tpu_custom_call.1
= control target key start
LH: loop header
LB: loop body
LE: loop exit
PB: predicated region body
PF: predicated region fallthrough
CT: control target
= control target key end

     0   :  { %10 = vsyncpa [#allocation3], 0  ;;  %s862_s0 = inlined_call_operand.vmem [shape: f32[2,4,256], index: 0, kind: input, shape index: {}]   ;;  %s863_s1 = inlined_call_operand.vmem [shape: f32[32,4], index: 1, kind: input, shape index: {}]   ;;  %s864_s2 = inlined_call_operand.vmem [shape: f32[32,1], index: 2, kind: input, shape index: {}]   ;;  %s865_s3 = inlined_call_operand.vmem [shape: f32[4,32], index: 3, kind: input, shape index: {}]   ;;  %s866_s4 = inlined_call_operand.vmem [shape: f32[4,1], index: 4, kind: input, shape index: {}]   ;;  %s867_s5 = inlined_call_operand.hbm [shape: f32[2,4,256], index: 5, kind: output, shape index: {}]  }
   0x1   :  { %12 = vsyncpa [#allocation3 + $0x1], 0  ;;  %s722_s18 = smov 0   ;;  %s724_s19 = smov 0  }
   0x2   :  { %s726_s20 = smov 0   ;;  %s728_s21 = smov 0  }
   0x3   :  { %s730_s22 = smov 0   ;;  %s732_s23 = smov 0  }
   0x4 LB: > { %s523_s24 = sadd.s32 4294967295, %s689_s23   ;;  %s524_s25 = sadd.s32 4294967294, %s689_s23   ;;  %s689_s23 = sphi %s732_s23, %s18_s23   ;;  %s685_s22 = sphi %s730_s22, %s874_s22   ;;  %s681_s21 = sphi %s728_s21, %s873_s21   ;;  %s677_s20 = sphi %s726_s20, %s872_s20   ;;  %s673_s19 = sphi %s724_s19, %s871_s19   ;;  %s669_s18 = sphi %s722_s18, %s870_s18  }
   0x5   : > { %s30_s26 = sadd.s32 1, %s685_s22  ;;  %s151_s27 = sadd.s32 1, %s677_s20 }
   0x6   : > { %p32_p0 = scmp.ge.s32.totalorder %s30_s26, 2  ;;  %p161_p1 = scmp.ne.s32.totalorder %s677_s20, %s673_s19 }
   0x7   : > { %p162_p2 = scmp.eq.s32.totalorder %s523_s24, 1  ;;  %p167_p3 = scmp.ne.s32.totalorder %s673_s19, %s669_s18 }
   0x8   : > { %s876_s26 = smov (%p32_p0, %s30_s26), 0  ;;  %p168_p5 = scmp.eq.s32.totalorder %s524_s25, 1 }
   0x9   : > { %p762_p4 = por %p162_p2, %p161_p1  ;;  %s146_s29 = ssub.s32 %s685_s22, %s876_s26 }
   0xa   : > { %p527_p6 = scmp.ge.s32.totalorder %s689_s23, 1  ;;  %p149_p7 = scmp.eq.s32.totalorder %s146_s29, 0 }
   0xb   : > { %p769_p8 = por %p168_p5, %p167_p3  ;;  %p211_p9 = scmp.lt.s32.totalorder %s689_s23, 3 }
   0xc   : > { %s775_s6 = scalar_select %p149_p7, %s677_s20, %s151_s27  }
   0xd   : > { %p212_p10 = pnand %p527_p6, %p211_p9 }
   0xe   : > { %p244_p11 = scmp.lt.s32.totalorder (!%p212_p10), %s681_s21, 1  ;;  %s240_s17 = sand.u32 (!%p212_p10), 1, %s673_s19  }
   0xf   : > { %215 = sbr.rel (%p212_p10) target bundleno = 326 (0x146), region = 40  ;;  %s528_s24 = sshll.u32 (!%p212_p10), %s240_s17, 3 }
  0x10   : > { %s549_s25 = sshll.u32 (!%p212_p10), %s681_s21, 3  ;;  %s242_s8 = scalar_lea.vmem (!%p212_p10), [#allocation2], %s528_s24 }
  0x11   : > { %s442_s7 = scalar_lea.hbm (!%p212_p10), %s867_s5, %s549_s25  ;;  %s444_s9 = sshll.u32 (!%p212_p10), %s242_s8, 4  ;;  %s445_s9 = int_to_ptr.vmem [resolvable:$true] %s444_s9 }
  0x12   : > { %s446_s10 = sshll.u32 (!%p212_p10), %s442_s7, 4  ;;  %s447_s10 = int_to_ptr.hbm [resolvable:$true] %s446_s10 }
  0x14   : > { %v691_v0 = vmov 0   ;;  %v260_v1 = vld [vmem:[%s864_s2 + $0x8] sm:$0xff]  ;;  %v262_v2 = vld [vmem:[%s864_s2 + $0x18] sm:$0xff]  ;;  %s245_s11 = scalar_select %p244_p11, %s681_s21, 1  ;;  %v259_v4 = vld [vmem:[%s864_s2] sm:$0xff]  ;;  %vm302_vm0 = vcmask 1043456  }
  0x15   : > { %609 = vset.pattern.permute.xlu1 %v691_v0  ;;  %608 = vset.pattern.permute.xlu0 %v691_v0  ;;  %v261_v5 = vld [vmem:[%s864_s2 + $0x10] sm:$0xff]  ;;  %v254_v6 = vld [vmem:[%s863_s1] sm:$0xff]  ;;  %vm289_vm1 = vcmask 31744   ;;  %v257_v9 = vld [vmem:[%s863_s1 + $0x18] sm:$0xff]  ;;  %vm378_vm2 = vcmask 261120   ;;  %s429_s21 = scalar_lea.sflag [#allocation3], %s240_s17 }
  0x16   : > { %272 = vperm.xlu1 %609, %v260_v1   ;;  %282 = vperm.xlu0 %608, %v262_v2   ;;  %s548_s12 = sshll.u32 %s245_s11, 3  ;;  %v255_v10 = vld [vmem:[%s863_s1 + $0x8] sm:$0xff]  ;;  %v256_v11 = vld [vmem:[%s863_s1 + $0x10] sm:$0xff]  ;;  %v263_v12 = vld [vmem:[%s866_s4] sm:$0xf]  ;;  %s625_s11 = sshra.s32 %s447_s10, 4  ;;  %s626_s11 = int_to_ptr.hbm [resolvable:$true] %s625_s11 }
  0x17   : > { %610 = vset.pattern.permute.xlu2 %v691_v0  ;;  %s251_s15 = scalar_lea.vmem %s862_s0, %s548_s12  ;;  %v258_v40 = vld [vmem:[%s865_s3] sm:$0xf]  ;;  %s627_s12 = scalar_lea.hbm %s626_s11, 8 }
  0x18   : > { %v264_v3 = vld [vmem:[%s251_s15] sm:$0xff]  ;;  %375 = vperm.xlu2 %610, %v263_v12   ;;  %p628_p12 = scmp.ne.s32.totalorder %s626_s11, %s627_s12  ;;  %s631_s15 = scalar_lea.hbm %s867_s5, 16 }
  0x19   : > { %286 = vst [vmem:[#allocation1] ss:$2 sm:$0xff] %v264_v3  ;;  %p632_p1 = scmp.lt.s32.totalorder %s626_s11, %s867_s5  ;;  %p633_p2 = scmp.lt.s32.totalorder %s631_s15, %s627_s12 }
  0x1a   : > { %p629_p13 = pnand %p628_p12, %p762_p4 }
  0x1b   : > { %p634_p3 = por %p633_p2, %p632_p1 }
  0x1c   : > { %p630_p0 = pneg %p629_p13 }
  0x1e   : > { %267 = vperm.xlu1 %609, %v259_v4   ;;  %277 = vperm.xlu0 %608, %v261_v5   ;;  %p635_p5 = pnand %p634_p3, %p630_p0 }
  0x20   : > { %v287_v7 = vld.sshfl [vmem:[#allocation1] sm:$0xff pattern:$0x75316420]  ;;  %v288_v8 = vld.sshfl [vmem:[#allocation1 + $0x8] sm:$0xff pattern:$0x75316420] }
  0x21   : > { %531 = vmatpush.msk.msra.mxu0 %vm302_vm0, %v287_v7  ;;  %536 = vmatpush.msk.msra.mxu1 %vm302_vm0, %v288_v8 }
  0x22   : > { %532 = vmatmul.msk.f32.vlgmr.msra.gmra.mxu0 %vm289_vm1, %v254_v6  ;;  %537 = vmatmul.msk.f32.vlgmr.msra.gmra.mxu1 %vm289_vm1, %v254_v6 }
  0x23   : > { %550 = vmatpush.msk.msra.mxu2 %vm302_vm0, %v287_v7  ;;  %551 = vmatpush.msk.msra.mxu3 %vm302_vm0, %v288_v8 }
  0x24   : > { %535 = vmatmul.msk.f32.vlgmr.msra.gmra.mxu2 %vm289_vm1, %v257_v9  ;;  %540 = vmatmul.msk.f32.vlgmr.msra.gmra.mxu3 %vm289_vm1, %v257_v9 }
  0x2a   : > { %533 = vmatmul.msk.f32.gmra.mxu0 %vm289_vm1, %v255_v10  ;;  %538 = vmatmul.msk.f32.gmra.mxu1 %vm289_vm1, %v255_v10 }
  0x32   : > { %534 = vmatmul.msk.f32.gmra.mxu0 %vm289_vm1, %v256_v11  ;;  %539 = vmatmul.msk.f32.gmra.mxu1 %vm289_vm1, %v256_v11 }
  0x72   : > { %v376_v42 = vpop.permute.xlu2 %375 }
  0x88   : > { %v283_v15 = vpop.permute.xlu0 %282  ;;  %v273_v16 = vpop.permute.xlu1 %272 }
  0x90   : > { %v278_v25 = vpop.permute.xlu0 %277  ;;  %v268_v27 = vpop.permute.xlu1 %267 }
  0x9f   : > { %v324_v13 = vpop.f32.mrf.mxu0  ;;  %v353_v14 = vpop.f32.mrf.mxu1 }
  0xa0   : > { %v325_v33 = vadd.f32 %v324_v13, %v268_v27  ;;  %v354_v35 = vadd.f32 %v353_v14, %v268_v27 }
  0xa2   : > { %v365_v39 = vmax.f32 %v325_v33, 0.0  ;;  %v366_v41 = vmax.f32 %v354_v35, 0.0 }
  0xa7   : > { %v327_v17 = vpop.f32.mrf.mxu0  ;;  %v333_v18 = vpop.f32.mrf.mxu2 }
  0xa8   : > { %v334_v19 = vadd.f32 %v333_v18, %v283_v15  ;;  %v356_v20 = vpop.f32.mrf.mxu1  ;;  %v362_v21 = vpop.f32.mrf.mxu3  ;;  %v328_v28 = vadd.f32 %v327_v17, %v273_v16 }
  0xa9   : > { %v363_v22 = vadd.f32 %v362_v21, %v283_v15  ;;  %v357_v31 = vadd.f32 %v356_v20, %v273_v16 }
  0xaa   : > { %v371_v23 = vmax.f32 %v334_v19, 0.0  ;;  %v367_v37 = vmax.f32 %v328_v28, 0.0 }
  0xab   : > { %v372_v24 = vmax.f32 %v363_v22, 0.0  ;;  %v368_v38 = vmax.f32 %v357_v31, 0.0 }
  0xac   : > { %394 = vmatpush.msrb.mxu2 %v371_v23 }
  0xad   : > { %414 = vmatpush.msrb.mxu3 %v372_v24 }
  0xaf   : > { %v330_v26 = vpop.f32.mrf.mxu0 }
  0xb0   : > { %v331_v29 = vadd.f32 %v330_v26, %v278_v25  ;;  %v359_v30 = vpop.f32.mrf.mxu1 }
  0xb1   : > { %v360_v32 = vadd.f32 %v359_v30, %v278_v25 }
  0xb2   : > { %v369_v34 = vmax.f32 %v331_v29, 0.0 }
  0xb3   : > { %v370_v36 = vmax.f32 %v360_v32, 0.0 }
  0xb4   : > { %395 = vmatpush.msrb.mxu2 %v369_v34 }
  0xb5   : > { %415 = vmatpush.msrb.mxu3 %v370_v36 }
  0xb6   : > { %396 = vmatpush.msrb.mxu2 %v367_v37 }
  0xb7   : > { %416 = vmatpush.msrb.mxu3 %v368_v38 }
  0xb8   : > { %397 = vmatpush.msrb.mxu2 %v365_v39 }
  0xb9   : > { %417 = vmatpush.msrb.mxu3 %v366_v41  ;;  %541 = vmatmul.msk.f32.vlgmr.msrb.gmra.mxu2 %vm378_vm2, %v258_v40 }
  0xba   : > { %542 = vmatmul.msk.f32.vlgmr.msrb.gmra.mxu3 %vm378_vm2, %v258_v40 }
 0x13c   : > { %v399_v44 = vpop.f32.mrf.mxu2 }
 0x13d   : > { %v419_v43 = vpop.f32.mrf.mxu3  ;;  %v400_v47 = vadd.f32 %v399_v44, %v376_v42 }
 0x13e   : > { %v420_v45 = vadd.f32 %v419_v43, %v376_v42 }
 0x140   : > { %v424_v46 = vrot.slane %v420_v45, 4 }
 0x142   : > { %v425_v48 = vsel %vm302_vm0, %v400_v47, %v424_v46 }
 0x143   : > { %427 = vst [vmem:[%s242_s8] sm:$0xff] %v425_v48 }
 0x144   : > { %638 = shalt.err (!%p635_p5)
}
 0x145   : > { %552 = dma.vmem_to_hbm [thread:$0]  (%p762_p4), %s445_s9, 128, %s447_s10, %s429_s21  }
 0x146 PF: > { %p558_p6 = scmp.ge.s32.totalorder %s689_s23, 2  ;;  %s458_s17 = sand.u32 1, %s669_s18  }
 0x147   : > { %s459_s25 = scalar_lea.sflag [#allocation3], %s458_s17 }
 0x148   : > { %p555_p7 = pnand %p558_p6, %p769_p8 }
 0x14a   : > { %p556_p9 = pneg %p555_p7 }
 0x14c   : > { %664 = dma.done.wait (%p556_p9), %s459_s25, 128  }
 0x14d   : > { %666 = vsyncadd (%p556_p9), %s459_s25, 4294967168  ;;  %s18_s23 = sadd.s32 1, %s689_s23   ;;  %s870_s18 = smov %s673_s19 }
 0x14e   : > { %p15_p10 = scmp.ge.s32.totalorder %s18_s23, 4   ;;  %s871_s19 = smov %s677_s20 }
 0x14f   : > { %s872_s20 = smov %s775_s6  ;;  %s873_s21 = smov %s685_s22 }
 0x150   : > { %s874_s22 = smov %s876_s26  ;;  %17 = sbr.rel (!%p15_p10) target bundleno = 4 (0x4), region = 75 }
 0x155   :  { %465 = vsyncpa [#allocation3], 1 }
 0x156   :  { %467 = vsyncpa [#allocation3 + $0x1], 1 }

</bundles_post_ra>
